<compile_context>
chip_gen: v7x
topology: tpu7x:2x2x1
jax: 0.10.0
libtpu: 0.0.40
codegen_flags: <defaults>
</compile_context>

<pallas_src>
import functools

import jax
import jax.numpy as jnp
from jax.experimental import pallas as pl
from jax.experimental.pallas import tpu as pltpu

_LANES = 512          # lane-dense last dim (multiple of 128 -> unmasked stores)
_BLOCK_ROWS = 1024    # 1024 x 512 x 4 B = 2 MiB per f32 block


def _leaky_relu_inv_kernel(x_ref, o_ref, *, inv_slope):
    x = x_ref[...]
    o_ref[...] = jnp.where(x >= 0, x, x * inv_slope)


@functools.partial(jax.jit, static_argnames=("negative_slope",))
def leaky_relu_inv(x, negative_slope=0.01):
    """Elementwise inverse-LeakyReLU via a Pallas TPU kernel."""
    orig_shape = x.shape
    dtype = x.dtype

    # Fold 1/slope into the kernel as a compile-time constant (f64 precision,
    # weak-typed at use, so it does not upcast bf16/fp16 inputs).
    inv_slope = 1.0 / float(negative_slope)

    flat = x.reshape(-1)
    n = flat.shape[0]

    # Sublane packing: 8 rows for 4-byte dtypes, 16 for 2-byte, 32 for 1-byte.
    sublanes = max(8, 32 // max(1, dtype.itemsize))
    tile_elems = sublanes * _LANES

    padded = pl.cdiv(n, tile_elems) * tile_elems
    if padded != n:
        flat = jnp.pad(flat, (0, padded - n))

    rows = padded // _LANES            # multiple of `sublanes`
    x2d = flat.reshape(rows, _LANES)

    # Fixed large block; ragged last block handled by the cdiv grid.
    br = _BLOCK_ROWS if rows >= _BLOCK_ROWS else rows
    grid = (pl.cdiv(rows, br),)

    kernel = functools.partial(_leaky_relu_inv_kernel, inv_slope=inv_slope)

    out2d = pl.pallas_call(
        kernel,
        out_shape=jax.ShapeDtypeStruct((rows, _LANES), dtype),
        grid=grid,
        in_specs=[pl.BlockSpec((br, _LANES), lambda i: (i, 0))],
        out_specs=pl.BlockSpec((br, _LANES), lambda i: (i, 0)),
        compiler_params=pltpu.CompilerParams(
            dimension_semantics=("parallel",)
        ),
    )(x2d)

    return out2d.reshape(-1)[:n].reshape(orig_shape)


if __name__ == "__main__":
    key = jax.random.PRNGKey(0)
    # NCHW input, small shapes consistent with a conv-style module
    x = jax.random.normal(key, (2, 4, 16, 16), dtype=jnp.float32)

    y = leaky_relu_inv(x, negative_slope=0.01)
    y = jax.block_until_ready(y)

    # reference check in plain JAX
    y_ref = jnp.where(x >= 0, x, x / 0.01)
    assert y.shape == x.shape
    assert y.dtype == x.dtype
    assert jnp.allclose(y, y_ref, rtol=1e-6, atol=1e-6)

    print("KERNEL_OK")
</pallas_src>

<mosaic_0001>
module attributes {stable_mosaic.version = 11 : i64} {
  func.func @_leaky_relu_inv_kernel(%arg0: i32, %arg1: memref<8x512xf32, #tpu.memory_space<vmem>>, %arg2: memref<8x512xf32, #tpu.memory_space<vmem>>) attributes {dimension_semantics = [#tpu.dimension_semantics<parallel>], iteration_bounds = array<i64: 1>, scalar_prefetch = 0 : i64, scratch_operands = 0 : i64, tpu.core_type = #tpu.core_type<tc>, window_params = [{transform_indices = @transform_0, window_bounds = array<i64: 8, 512>}, {transform_indices = @transform_1, window_bounds = array<i64: 8, 512>}]} {
    %c0 = arith.constant 0 : index
    %c0_0 = arith.constant 0 : index
    %0 = vector.load %arg1[%c0, %c0_0] : memref<8x512xf32, #tpu.memory_space<vmem>>, vector<8x512xf32>
    %cst = arith.constant 0.000000e+00 : f32
    %1 = vector.broadcast %cst : f32 to vector<8x512xf32>
    %2 = arith.cmpf oge, %0, %1 : vector<8x512xf32>
    %cst_1 = arith.constant 1.000000e+02 : f32
    %3 = vector.broadcast %cst_1 : f32 to vector<8x512xf32>
    %4 = arith.mulf %0, %3 : vector<8x512xf32>
    %5 = arith.select %2, %0, %4 : vector<8x512xi1>, vector<8x512xf32>
    %c0_2 = arith.constant 0 : index
    %c0_3 = arith.constant 0 : index
    %6 = vector.load %arg2[%c0_2, %c0_3] : memref<8x512xf32, #tpu.memory_space<vmem>>, vector<8x512xf32>
    tpu.vector_store %arg2[%c0_2, %c0_3], %5 {strides = array<i32>} : memref<8x512xf32, #tpu.memory_space<vmem>>, vector<8x512xf32>,
    return
  }
  func.func @transform_0(%arg0: i32) -> (i32, i32) {
    %c0_i32 = arith.constant 0 : i32
    %c0_i32_0 = arith.constant 0 : i32
    return %arg0, %c0_i32 : i32, i32
  }
  func.func @transform_1(%arg0: i32) -> (i32, i32) {
    %c0_i32 = arith.constant 0 : i32
    %c0_i32_0 = arith.constant 0 : i32
    return %arg0, %c0_i32 : i32, i32
  }
}

</mosaic_0001>

<bundles_post_ra>
// kernel: leaky_relu_inv.1
= control target key start
LH: loop header
LB: loop body
LE: loop exit
PB: predicated region body
PF: predicated region fallthrough
CT: control target
= control target key end

     0   :  { %s66_s0 = inlined_call_operand.vmem [shape: f32[8,512], index: 0, kind: input, shape index: {}]   ;;  %s67_s1 = inlined_call_operand.vmem [shape: f32[8,512], index: 1, kind: output, shape index: {}]  }
   0x1   :  { %v8_v0 = vld [vmem:[%s66_s0] sm:$0xff]  ;;  %v9_v1 = vld [vmem:[%s66_s0 + $0x8] sm:$0xff]  ;;  %v10_v2 = vld [vmem:[%s66_s0 + $0x10] sm:$0xff] }
   0x2   :  { %vm12_vm0 = vcmp.ge.f32.partialorder %v8_v0, 0.0  ;;  %v16_v3 = vmul.f32 100.0, %v8_v0  ;;  %vm13_vm1 = vcmp.ge.f32.partialorder %v9_v1, 0.0  ;;  %v17_v4 = vmul.f32 100.0, %v9_v1  ;;  %v11_v5 = vld [vmem:[%s66_s0 + $0x18] sm:$0xff] }
   0x3   :  { %vm14_vm2 = vcmp.ge.f32.partialorder %v10_v2, 0.0  ;;  %v18_v6 = vmul.f32 100.0, %v10_v2  ;;  %vm15_vm3 = vcmp.ge.f32.partialorder %v11_v5, 0.0  ;;  %v19_v7 = vmul.f32 100.0, %v11_v5 }
   0x4   :  { %v20_v8 = vsel %vm12_vm0, %v8_v0, %v16_v3  ;;  %v21_v9 = vsel %vm13_vm1, %v9_v1, %v17_v4 }
   0x5   :  { %24 = vst [vmem:[%s67_s1] sm:$0xff] %v20_v8  ;;  %25 = vst [vmem:[%s67_s1 + $0x8] sm:$0xff] %v21_v9  ;;  %v22_v10 = vsel %vm14_vm2, %v10_v2, %v18_v6  ;;  %v23_v11 = vsel %vm15_vm3, %v11_v5, %v19_v7 }
   0x6   :  { %26 = vst [vmem:[%s67_s1 + $0x10] sm:$0xff] %v22_v10  ;;  %27 = vst [vmem:[%s67_s1 + $0x18] sm:$0xff] %v23_v11 }

</bundles_post_ra>
